<compile_context>
chip_gen: v7x
topology: tpu7x:2x2x1
jax: 0.10.0
libtpu: 0.0.40
codegen_flags: <defaults>
</compile_context>

<pallas_src>
import functools

import numpy as np
import jax
import jax.numpy as jnp
from jax import lax
from jax.experimental import pallas as pl
from jax.experimental.pallas import tpu as pltpu

SENTINEL = 1e20     # invalid-pair d^2 marker
FAR = 1e8           # padded candidate columns parked here -> always > cutoff


def _round_up(x, m):
    return ((x + m - 1) // m) * m


def _pair_d2_kernel(pos_ref, candT_ref, d2_ref, *, cutoff2, n_img, zero_off_idx):
    """Masked squared distances between center atoms and candidate images.

    pos_ref:   (TN, 8)  rows = centers, lanes 0..2 = xyz (rest zero padding)
    candT_ref: (8, TM)  sublanes 0..2 = xyz of candidate images, lanes = candidates
    d2_ref:    (TN, TM) masked squared distances (1e20 sentinel for invalid)

    Interior tiles do only the d^2 math + cutoff select.  No OOB masking is
    needed (padded columns are parked FAR away, padded rows are dropped in the
    wrapper).  The index-based self-exclusion runs only in tiles intersected
    by the diagonal band col == row*n_img + zero_off_idx.
    """
    jm = pl.program_id(0)          # candidate (M) tile — leading / megacore axis
    im = pl.program_id(1)          # center (N) tile
    tn, tm = d2_ref.shape

    pos = pos_ref[...]             # (TN, 8)
    cT = candT_ref[...]            # (8, TM)

    # Direct-difference d^2 on the VPU: exact 0 for coincident points, no
    # |a|^2 + |b|^2 - 2ab cancellation.
    dx = pos[:, 0:1] - cT[0:1, :]  # (TN, TM) via broadcast
    dy = pos[:, 1:2] - cT[1:2, :]
    dz = pos[:, 2:3] - cT[2:3, :]
    d2 = dx * dx + dy * dy + dz * dz
    d2m = jnp.where(d2 > cutoff2, SENTINEL, d2)
    d2_ref[...] = d2m

    # Self columns for this row tile span [band_lo, band_hi]; only column tiles
    # overlapping that band pay for the iotas / int compare / extra select.
    band_lo = im * (tn * n_img) + zero_off_idx
    band_hi = band_lo + (tn - 1) * n_img
    col_lo = jm * tm

    @pl.when(jnp.logical_and(band_hi >= col_lo, band_lo < col_lo + tm))
    def _():
        row_io = lax.broadcasted_iota(jnp.int32, (tn, tm), 0)
        col_io = lax.broadcasted_iota(jnp.int32, (tn, tm), 1)
        base = band_lo - col_lo                       # scalar, folded once per tile
        is_self = col_io == row_io * n_img + base
        d2_ref[...] = jnp.where(is_self, SENTINEL, d2m)


def _image_offsets(cell, cutoff):
    """Integer lattice image offsets needed to cover `cutoff` (host-side, static)."""
    cell = np.asarray(cell, np.float64)
    vol = abs(np.linalg.det(cell))
    reps = []
    for i in range(3):
        cross = np.cross(cell[(i + 1) % 3], cell[(i + 2) % 3])
        h = vol / np.linalg.norm(cross)               # perpendicular height
        reps.append(int(np.ceil(cutoff / h)))
    ranges = [np.arange(-r, r + 1) for r in reps]
    offs = np.stack(np.meshgrid(*ranges, indexing="ij"), axis=-1).reshape(-1, 3)
    return offs.astype(np.int32)                      # (n_img, 3)


def atom_graph_converter(positions, cell, cutoff=10.0, max_neighbors=50,
                         tile_n=None, tile_m=None):
    """JAX/Pallas equivalent of AtomGraphConverter.forward.

    positions: (N, 3) f32 Cartesian coords.  cell: (3, 3) f32 lattice vectors (rows).
    Returns (edge_index (2, N*max_neighbors) i32, edge_distance (N*max_neighbors,) f32,
             offsets (N*max_neighbors, 3) f32, edge_mask (N*max_neighbors,) bool).
    Slots with edge_mask == False are padding; their index/offset/distance are 0.
    """
    positions = jnp.asarray(positions, jnp.float32)
    cell = jnp.asarray(cell, jnp.float32)
    N = positions.shape[0]

    offs_np = _image_offsets(np.asarray(cell), float(cutoff))   # (n_img, 3)
    n_img = offs_np.shape[0]
    zero_off_idx = int(np.where((offs_np == 0).all(axis=1))[0][0])
    offs = jnp.asarray(offs_np, jnp.int32)

    shift_vec = offs.astype(jnp.float32) @ cell                 # (n_img, 3)
    shifted = (positions[:, None, :] + shift_vec[None, :, :]).reshape(N * n_img, 3)
    M = N * n_img                                 # candidate k = j * n_img + image

    # Tiles: 256 x 8192 f32 output tile = 8 MiB (16 MiB double-buffered).  Fits
    # v5e/v6e (128 MiB physical) and v7x (64 MiB) once vmem_limit is raised.
    TN = _round_up(min(256 if tile_n is None else tile_n, _round_up(N, 8)), 8)
    TM = _round_up(min(8192 if tile_m is None else tile_m, _round_up(M, 128)), 128)
    Np = _round_up(N, TN)
    Mp = _round_up(M, TM)
    gN = Np // TN
    gM = Mp // TM

    # Minimal coordinate padding: 3 -> 8 lanes / sublanes.  Padded candidate
    # columns are parked FAR so they land on the sentinel via the cutoff test.
    pos_p = jnp.zeros((Np, 8), jnp.float32).at[:N, :3].set(positions)
    candT_p = jnp.zeros((8, Mp), jnp.float32)
    candT_p = candT_p.at[:3, :].set(FAR)
    candT_p = candT_p.at[:3, :M].set(shifted.T)

    kernel = functools.partial(
        _pair_d2_kernel,
        cutoff2=float(cutoff) ** 2,
        n_img=n_img,
        zero_off_idx=zero_off_idx,
    )
    cost = pl.CostEstimate(
        flops=8 * Np * Mp,
        transcendentals=0,
        bytes_accessed=4 * (Np * Mp + 8 * Np + 8 * Mp),
    )
    d2_full = pl.pallas_call(
        kernel,
        out_shape=jax.ShapeDtypeStruct((Np, Mp), jnp.float32),
        grid=(gM, gN),                    # M leading: megacore splits even if gN == 1
        in_specs=[pl.BlockSpec((TN, 8), lambda jm, im: (im, 0)),
                  pl.BlockSpec((8, TM), lambda jm, im: (0, jm))],
        out_specs=pl.BlockSpec((TN, TM), lambda jm, im: (im, jm)),
        compiler_params=pltpu.CompilerParams(
            dimension_semantics=("parallel", "parallel"),
            vmem_limit_bytes=48 << 20),
        cost_estimate=cost,
    )(pos_p, candT_p)

    # Exact per-center selection by squared distance on the *padded* matrix
    # (padded columns already hold the sentinel -> no hidden [:, :M] copy);
    # padded rows are dropped from the small (Np, K) result afterwards.
    K = min(max_neighbors, M)
    if gM > 1:
        # Two-stage exact top-K: per-TM-chunk top-K, then top-K over gM*k1.
        k1 = min(K, TM)
        neg1, idx1 = lax.top_k(-d2_full.reshape(Np, gM, TM), k1)    # (Np, gM, k1)
        idx1 = idx1 + (jnp.arange(gM, dtype=jnp.int32) * TM)[None, :, None]
        neg2, idx2 = lax.top_k(neg1.reshape(Np, gM * k1), K)        # (Np, K)
        order = jnp.take_along_axis(idx1.reshape(Np, gM * k1), idx2, axis=1)
        d2_sel = -neg2
    else:
        neg, order = lax.top_k(-d2_full, K)
        d2_sel = -neg
    d2_sel = d2_sel[:N]
    order = order[:N]
    if K < max_neighbors:                         # fewer candidates than slots
        pad = max_neighbors - K
        d2_sel = jnp.pad(d2_sel, ((0, 0), (0, pad)), constant_values=SENTINEL)
        order = jnp.pad(order, ((0, 0), (0, pad)))

    valid = d2_sel < 1e19
    n_index = jnp.where(valid, order // n_img, 0).astype(jnp.int32)   # neighbor j
    off_idx = order % n_img                                           # image index
    edge_offsets = jnp.where(valid[..., None],
                             offs[off_idx].astype(jnp.float32), 0.0)  # (N, K, 3)
    c_index = jnp.broadcast_to(jnp.arange(N, dtype=jnp.int32)[:, None],
                               (N, max_neighbors))

    edge_index = jnp.stack([n_index.reshape(-1), c_index.reshape(-1)], axis=0)
    edge_distance = jnp.where(valid, jnp.sqrt(d2_sel), 0.0).reshape(-1)
    edge_offsets = edge_offsets.reshape(-1, 3)
    edge_mask = valid.reshape(-1)
    return edge_index, edge_distance, edge_offsets, edge_mask


if __name__ == "__main__":
    key = jax.random.PRNGKey(0)
    N = 8
    cutoff = 6.0
    max_neighbors = 12
    cell = jnp.array([[5.5, 0.0, 0.0],
                      [0.0, 6.0, 0.0],
                      [0.5, 0.0, 6.5]], dtype=jnp.float32)
    frac = jax.random.uniform(key, (N, 3), dtype=jnp.float32)
    positions = frac @ cell

    # ---- numpy reference (same image set, float64 brute force, index-based
    # self exclusion) ----
    pos_np = np.asarray(positions, np.float64)
    cell_np = np.asarray(cell, np.float64)
    offs_np = _image_offsets(cell_np, cutoff)
    n_img = offs_np.shape[0]
    zero_idx = int(np.where((offs_np == 0).all(axis=1))[0][0])
    shifted_np = (pos_np[:, None, :]
                  + (offs_np.astype(np.float64) @ cell_np)[None, :, :]).reshape(-1, 3)
    d_ref = np.linalg.norm(shifted_np[None, :, :] - pos_np[:, None, :], axis=-1)
    self_mask = np.zeros_like(d_ref, dtype=bool)
    for i in range(N):
        self_mask[i, i * n_img + zero_idx] = True
    d_ref = np.where((d_ref > cutoff) | self_mask, 1e10, d_ref)
    order_ref = np.argsort(d_ref, axis=1)[:, :max_neighbors]
    dref_sorted = np.take_along_axis(d_ref, order_ref, axis=1)
    mask_ref = dref_sorted < 1e9

    def check(tile_m, tag):
        ei, ed, eo, em = atom_graph_converter(
            positions, cell, cutoff=cutoff, max_neighbors=max_neighbors,
            tile_m=tile_m)
        jax.block_until_ready(ed)
        got_d = np.asarray(ed).reshape(N, max_neighbors)
        got_mask = np.asarray(em).reshape(N, max_neighbors)
        assert np.array_equal(got_mask, mask_ref), f"edge mask mismatch ({tag})"
        assert np.allclose(np.where(mask_ref, got_d, 0.0),
                           np.where(mask_ref, dref_sorted, 0.0),
                           atol=1e-3), f"edge distance mismatch ({tag})"
        # center indices must be sorted blocks of size max_neighbors
        assert np.array_equal(
            np.asarray(ei)[1].reshape(N, max_neighbors),
            np.broadcast_to(np.arange(N)[:, None], (N, max_neighbors))), tag

    check(tile_m=None, tag="single-tile")
    check(tile_m=128, tag="multi-tile + two-stage top-k")  # exercises gM > 1 path
    print("KERNEL_OK")
</pallas_src>

<mosaic_0001>
module attributes {stable_mosaic.version = 11 : i64} {
  func.func @_pair_d2_kernel(%arg0: i32, %arg1: i32, %arg2: memref<8x8xf32, #tpu.memory_space<vmem>>, %arg3: memref<8x640xf32, #tpu.memory_space<vmem>>, %arg4: memref<8x640xf32, #tpu.memory_space<vmem>>) attributes {dimension_semantics = [#tpu.dimension_semantics<parallel>, #tpu.dimension_semantics<parallel>], iteration_bounds = array<i64: 1, 1>, scalar_prefetch = 0 : i64, scratch_operands = 0 : i64, tpu.core_type = #tpu.core_type<tc>, window_params = [{transform_indices = @transform_0, window_bounds = array<i64: 8, 8>}, {transform_indices = @transform_1, window_bounds = array<i64: 8, 640>}, {transform_indices = @transform_2, window_bounds = array<i64: 8, 640>}]} {
    %c0 = arith.constant 0 : index
    %c0_0 = arith.constant 0 : index
    %0 = vector.load %arg2[%c0, %c0_0] : memref<8x8xf32, #tpu.memory_space<vmem>>, vector<8x8xf32>
    %c0_1 = arith.constant 0 : index
    %c0_2 = arith.constant 0 : index
    %1 = vector.load %arg3[%c0_1, %c0_2] : memref<8x640xf32, #tpu.memory_space<vmem>>, vector<8x640xf32>
    %2 = vector.extract_strided_slice %0 {offsets = [0, 0], sizes = [8, 1], strides = [1, 1]} : vector<8x8xf32> to vector<8x1xf32>
    %3 = vector.extract_strided_slice %1 {offsets = [0, 0], sizes = [1, 640], strides = [1, 1]} : vector<8x640xf32> to vector<1x640xf32>
    %4 = vector.broadcast %2 : vector<8x1xf32> to vector<8x640xf32>
    %5 = vector.broadcast %3 : vector<1x640xf32> to vector<8x640xf32>
    %6 = arith.subf %4, %5 : vector<8x640xf32>
    %7 = vector.extract_strided_slice %0 {offsets = [0, 1], sizes = [8, 1], strides = [1, 1]} : vector<8x8xf32> to vector<8x1xf32>
    %8 = vector.extract_strided_slice %1 {offsets = [1, 0], sizes = [1, 640], strides = [1, 1]} : vector<8x640xf32> to vector<1x640xf32>
    %9 = vector.broadcast %7 : vector<8x1xf32> to vector<8x640xf32>
    %10 = vector.broadcast %8 : vector<1x640xf32> to vector<8x640xf32>
    %11 = arith.subf %9, %10 : vector<8x640xf32>
    %12 = vector.extract_strided_slice %0 {offsets = [0, 2], sizes = [8, 1], strides = [1, 1]} : vector<8x8xf32> to vector<8x1xf32>
    %13 = vector.extract_strided_slice %1 {offsets = [2, 0], sizes = [1, 640], strides = [1, 1]} : vector<8x640xf32> to vector<1x640xf32>
    %14 = vector.broadcast %12 : vector<8x1xf32> to vector<8x640xf32>
    %15 = vector.broadcast %13 : vector<1x640xf32> to vector<8x640xf32>
    %16 = arith.subf %14, %15 : vector<8x640xf32>
    %17 = arith.mulf %6, %6 : vector<8x640xf32>
    %18 = arith.mulf %11, %11 : vector<8x640xf32>
    %19 = arith.addf %17, %18 : vector<8x640xf32>
    %20 = arith.mulf %16, %16 : vector<8x640xf32>
    %21 = arith.addf %19, %20 : vector<8x640xf32>
    %cst = arith.constant 3.600000e+01 : f32
    %22 = vector.broadcast %cst : f32 to vector<8x640xf32>
    %23 = arith.cmpf ogt, %21, %22 : vector<8x640xf32>
    %cst_3 = arith.constant 1.000000e+20 : f32
    %24 = vector.broadcast %cst_3 : f32 to vector<8x640xf32>
    %25 = arith.select %23, %24, %21 : vector<8x640xi1>, vector<8x640xf32>
    %c0_4 = arith.constant 0 : index
    %c0_5 = arith.constant 0 : index
    %26 = vector.load %arg4[%c0_4, %c0_5] : memref<8x640xf32, #tpu.memory_space<vmem>>, vector<8x640xf32>
    tpu.vector_store %arg4[%c0_4, %c0_5], %25 {strides = array<i32>} : memref<8x640xf32, #tpu.memory_space<vmem>>, vector<8x640xf32>,
    %c600_i32 = arith.constant 600 : i32
    %27 = arith.muli %arg1, %c600_i32 : i32
    %c37_i32 = arith.constant 37 : i32
    %28 = arith.addi %27, %c37_i32 : i32
    %c525_i32 = arith.constant 525 : i32
    %29 = arith.addi %28, %c525_i32 : i32
    %c640_i32 = arith.constant 640 : i32
    %30 = arith.muli %arg0, %c640_i32 : i32
    %31 = arith.cmpi sge, %29, %30 : i32
    %c640_i32_6 = arith.constant 640 : i32
    %32 = arith.addi %30, %c640_i32_6 : i32
    %33 = arith.cmpi slt, %28, %32 : i32
    %34 = arith.andi %31, %33 : i1
    %35 = arith.extui %34 : i1 to i32
    %c0_i32 = arith.constant 0 : i32
    %36 = arith.cmpi ne, %35, %c0_i32 : i32
    scf.if %36 {
      %37 = tpu.iota {dimensions = array<i32: 0>} : vector<8x640xi32>
      %38 = tpu.iota {dimensions = array<i32: 1>} : vector<8x640xi32>
      %39 = arith.subi %28, %30 : i32
      %c75_i32 = arith.constant 75 : i32
      %40 = vector.broadcast %c75_i32 : i32 to vector<8x640xi32>
      %41 = arith.muli %37, %40 : vector<8x640xi32>
      %42 = vector.broadcast %39 : i32 to vector<8x640xi32>
      %43 = arith.addi %41, %42 : vector<8x640xi32>
      %44 = arith.cmpi eq, %38, %43 : vector<8x640xi32>
      %cst_7 = arith.constant 1.000000e+20 : f32
      %45 = vector.broadcast %cst_7 : f32 to vector<8x640xf32>
      %46 = arith.select %44, %45, %25 : vector<8x640xi1>, vector<8x640xf32>
      %c0_8 = arith.constant 0 : index
      %c0_9 = arith.constant 0 : index
      %47 = vector.load %arg4[%c0_8, %c0_9] : memref<8x640xf32, #tpu.memory_space<vmem>>, vector<8x640xf32>
      tpu.vector_store %arg4[%c0_8, %c0_9], %46 {strides = array<i32>} : memref<8x640xf32, #tpu.memory_space<vmem>>, vector<8x640xf32>,
    } else {
    }
    return
  }
  func.func @transform_0(%arg0: i32, %arg1: i32) -> (i32, i32) {
    %c0_i32 = arith.constant 0 : i32
    %c0_i32_0 = arith.constant 0 : i32
    return %arg1, %c0_i32 : i32, i32
  }
  func.func @transform_1(%arg0: i32, %arg1: i32) -> (i32, i32) {
    %c0_i32 = arith.constant 0 : i32
    %c0_i32_0 = arith.constant 0 : i32
    return %c0_i32, %arg0 : i32, i32
  }
  func.func @transform_2(%arg0: i32, %arg1: i32) -> (i32, i32) {
    %c0_i32 = arith.constant 0 : i32
    return %arg1, %arg0 : i32, i32
  }
}

</mosaic_0001>

<bundles_post_ra>
// kernel: tpu_custom_call.1
= control target key start
LH: loop header
LB: loop body
LE: loop exit
PB: predicated region body
PF: predicated region fallthrough
CT: control target
= control target key end

     0   :  { %7 = vsyncpa [#allocation3], 0  ;;  %s375_s0 = inlined_call_operand.hbm [shape: f32[8,8], index: 0, kind: input, shape index: {}]   ;;  %s376_s1 = inlined_call_operand.hbm [shape: f32[8,640], index: 1, kind: input, shape index: {}]   ;;  %s377_s2 = inlined_call_operand.hbm [shape: f32[8,640], index: 2, kind: output, shape index: {}]  }
   0x1   :  { %8 = vsyncpa [#allocation6], 0 }
   0x2   :  { %9 = vsyncpa [#allocation4], 0  ;;  %s306_s9 = smov [#allocation2]   ;;  %s307_s11 = smov [#allocation5]  }
   0x3   :  { %s16_s10 = sshll.u32 %s306_s9, 4  ;;  %s26_s12 = sshll.u32 %s307_s11, 4  ;;  %s17_s10 = int_to_ptr.vmem [resolvable:$true] %s16_s10  ;;  %s27_s12 = int_to_ptr.vmem [resolvable:$true] %s26_s12 }
   0x4   :  { %s234_s15 = scalar_lea.hbm %s375_s0, 128 }
   0x5   :  { %p235_p0 = scmp.ne.s32.totalorder %s375_s0, %s234_s15  ;;  %p238_p1 = scmp.lt.u32.totalorder %s234_s15, %s375_s0 }
   0x7   :  { %p240_p2 = pnand %p238_p1, %p235_p0 }
   0x9   :  { %243 = shalt.err (!%p240_p2)
}
   0xa   :  { %s244_s20 = scalar_lea.vmem %s17_s10, 128  ;;  %p249_p4 = scmp.lt.s32.totalorder %s17_s10, %s17_s10 }
   0xb   :  { %p245_p3 = scmp.ne.s32.totalorder %s17_s10, %s244_s20  ;;  %p250_p5 = scmp.lt.s32.totalorder %s244_s20, %s244_s20 }
   0xd   :  { %p251_p6 = por %p250_p5, %p249_p4 }
   0xf   :  { %p252_p7 = pnand %p251_p6, %p245_p3 }
  0x11   :  { %255 = shalt.err (!%p252_p7)
}
  0x12   :  { %19 = dma.hbm_to_vmem [thread:$0]  %s375_s0, 128, %s17_s10, [#allocation3]  }
  0x13   :  { %s256_s25 = scalar_lea.hbm %s376_s1, 640 }
  0x14   :  { %p257_p8 = scmp.ne.s32.totalorder %s376_s1, %s256_s25  ;;  %p260_p9 = scmp.lt.u32.totalorder %s256_s25, %s376_s1 }
  0x16   :  { %p262_p10 = pnand %p260_p9, %p257_p8 }
  0x18   :  { %265 = shalt.err (!%p262_p10)
}
  0x19   :  { %s266_s30 = scalar_lea.vmem %s27_s12, 640  ;;  %p271_p12 = scmp.lt.s32.totalorder %s27_s12, %s27_s12 }
  0x1a   :  { %p267_p11 = scmp.ne.s32.totalorder %s27_s12, %s266_s30  ;;  %p272_p13 = scmp.lt.s32.totalorder %s266_s30, %s266_s30 }
  0x1c   :  { %p273_p0 = por %p272_p13, %p271_p12 }
  0x1e   :  { %p274_p1 = pnand %p273_p0, %p267_p11 }
  0x20   :  { %277 = shalt.err (!%p274_p1)
}
  0x21   :  { %29 = dma.hbm_to_vmem [thread:$0]  %s376_s1, 640, %s27_s12, [#allocation6]  }
  0x22   :  { %300 = dma.done.wait [#allocation3], 128  }
  0x23   :  { %301 = vsyncadd [#allocation3], 4294967168 }
  0x24   :  { %302 = dma.done.wait [#allocation6], 640  }
  0x25   :  { %303 = vsyncadd [#allocation6], 4294966656  ;;  %v308_v0 = vmov 0   ;;  %v309_v1 = vmov 2   ;;  %v36_v2 = vld [vmem:[#allocation2] sm:$0xff]  ;;  %v310_v3 = vmov 1   ;;  %v47_v4 = vlaneseq }
  0x26   :  { %230 = vset.pattern.permute.xlu0 %v308_v0  ;;  %232 = vset.pattern.permute.xlu1 %v309_v1  ;;  %v37_v6 = vld [vmem:[#allocation5] sm:$0xff]  ;;  %v38_v8 = vld [vmem:[#allocation5 + $0x8] sm:$0xff]  ;;  %v39_v9 = vld [vmem:[#allocation5 + $0x10] sm:$0xff]  ;;  %s311_s1 = smov [#allocation7]  }
  0x27   :  { %44 = vperm.xlu0 %230, %v36_v2   ;;  %102 = vperm.xlu1 %232, %v36_v2   ;;  %v48_v5 = vshrl.u32 %v47_v4, 7  ;;  %v40_v10 = vld [vmem:[#allocation5 + $0x18] sm:$0xff]  ;;  %v41_v12 = vld [vmem:[#allocation5 + $0x20] sm:$0xff]  ;;  %v351_v20 = vand.u32 127, %v47_v4  ;;  %s214_s4 = sshll.u32 %s311_s1, 4  ;;  %s215_s4 = int_to_ptr.vmem [resolvable:$true] %s214_s4 }
  0x28   :  { %s278_s5 = scalar_lea.vmem %s215_s4, 640  ;;  %p283_p3 = scmp.lt.s32.totalorder %s215_s4, %s215_s4 }
  0x29   :  { %v49_v7 = vsub.s32 0, %v48_v5  ;;  %v107_v11 = vsub.s32 2, %v48_v5  ;;  %v78_v13 = vsub.s32 1, %v48_v5  ;;  %v190_v24 = vmul.u32 75, %v48_v5  ;;  %p279_p2 = scmp.ne.s32.totalorder %s215_s4, %s278_s5  ;;  %p284_p4 = scmp.lt.s32.totalorder %s278_s5, %s278_s5 }
  0x2a   :  { %v185_v37 = vadd.s32 128, %v351_v20  ;;  %v186_v39 = vadd.s32 256, %v351_v20 }
  0x2b   :  { %231 = vset.pattern.permute.xlu0 %v310_v3  ;;  %v50_v14 = vrot.slane %v37_v6, %v49_v7  ;;  %v54_v15 = vrot.slane %v38_v8, %v49_v7  ;;  %v58_v16 = vrot.slane %v39_v9, %v49_v7  ;;  %v62_v17 = vrot.slane %v40_v10, %v49_v7  ;;  %p285_p5 = por %p284_p4, %p283_p3 }
  0x2c   :  { %73 = vperm.xlu0 %231, %v36_v2   ;;  %v66_v18 = vrot.slane %v41_v12, %v49_v7  ;;  %v108_v19 = vrot.slane %v37_v6, %v107_v11  ;;  %v79_v21 = vrot.slane %v37_v6, %v78_v13  ;;  %v112_v22 = vrot.slane %v38_v8, %v107_v11 }
  0x2d   :  { %v116_v23 = vrot.slane %v39_v9, %v107_v11  ;;  %v83_v26 = vrot.slane %v38_v8, %v78_v13  ;;  %v87_v27 = vrot.slane %v39_v9, %v78_v13  ;;  %v120_v28 = vrot.slane %v40_v10, %v107_v11  ;;  %p286_p6 = pnand %p285_p5, %p279_p2 }
  0x2e   :  { %v124_v29 = vrot.slane %v41_v12, %v107_v11  ;;  %v91_v35 = vrot.slane %v40_v10, %v78_v13  ;;  %v95_v36 = vrot.slane %v41_v12, %v78_v13  ;;  %v192_v40 = vadd.s32 37, %v190_v24 }
  0x2f   :  { %v187_v2 = vadd.s32 384, %v351_v20  ;;  %v188_v9 = vadd.s32 512, %v351_v20 }
  0x30   :  { %233 = vset.pattern.permute.xlu0 %v309_v1  ;;  %vm193_vm0 = vcmp.eq.s32.totalorder %v351_v20, %v192_v40  ;;  %vm194_vm1 = vcmp.eq.s32.totalorder %v185_v37, %v192_v40  ;;  %vm195_vm2 = vcmp.eq.s32.totalorder %v186_v39, %v192_v40 }
  0x31   :  { %vm196_vm3 = vcmp.eq.s32.totalorder %v187_v2, %v192_v40  ;;  %vm197_vm8 = vcmp.eq.s32.totalorder %v188_v9, %v192_v40 }
  0xa6   :  { %v45_v25 = vpop.permute.xlu0 %44  ;;  %v103_v30 = vpop.permute.xlu1 %102 }
  0xa7   :  { %v67_v31 = vsub.f32 %v45_v25, %v50_v14  ;;  %v68_v32 = vsub.f32 %v45_v25, %v54_v15  ;;  %v69_v33 = vsub.f32 %v45_v25, %v58_v16  ;;  %v70_v34 = vsub.f32 %v45_v25, %v62_v17 }
  0xa8   :  { %v125_v38 = vsub.f32 %v103_v30, %v108_v19  ;;  %v126_v41 = vsub.f32 %v103_v30, %v112_v22  ;;  %v127_v42 = vsub.f32 %v103_v30, %v116_v23  ;;  %v71_v43 = vsub.f32 %v45_v25, %v66_v18 }
  0xa9   :  { %v130_v44 = vmul.f32 %v67_v31, %v67_v31  ;;  %v131_v45 = vmul.f32 %v68_v32, %v68_v32  ;;  %v128_v46 = vsub.f32 %v103_v30, %v120_v28  ;;  %v132_v47 = vmul.f32 %v69_v33, %v69_v33 }
  0xaa   :  { %v133_v48 = vmul.f32 %v70_v34, %v70_v34  ;;  %v129_v50 = vsub.f32 %v103_v30, %v124_v29  ;;  %v145_v51 = vmul.f32 %v125_v38, %v125_v38  ;;  %v146_v57 = vmul.f32 %v126_v41, %v126_v41 }
  0xab   :  { %v74_v49 = vpop.permute.xlu0 %73  ;;  %v147_v58 = vmul.f32 %v127_v42, %v127_v42  ;;  %v148_v59 = vmul.f32 %v128_v46, %v128_v46  ;;  %v134_v0 = vmul.f32 %v71_v43, %v71_v43 }
  0xac   :  { %v96_v52 = vsub.f32 %v74_v49, %v79_v21  ;;  %v97_v53 = vsub.f32 %v74_v49, %v83_v26  ;;  %v98_v54 = vsub.f32 %v74_v49, %v87_v27  ;;  %v99_v55 = vsub.f32 %v74_v49, %v91_v35 }
  0xad   :  { %v100_v56 = vsub.f32 %v74_v49, %v95_v36  ;;  %v149_v3 = vmul.f32 %v129_v50, %v129_v50 }
  0xae   :  { %v135_v60 = vmul.f32 %v96_v52, %v96_v52  ;;  %v136_v61 = vmul.f32 %v97_v53, %v97_v53  ;;  %v137_v62 = vmul.f32 %v98_v54, %v98_v54  ;;  %v138_v63 = vmul.f32 %v99_v55, %v99_v55 }
  0xaf   :  { %v139_v1 = vmul.f32 %v100_v56, %v100_v56 }
  0xb0   :  { %v140_v4 = vadd.f32 %v135_v60, %v130_v44  ;;  %v141_v5 = vadd.f32 %v136_v61, %v131_v45  ;;  %v142_v6 = vadd.f32 %v137_v62, %v132_v47  ;;  %v143_v7 = vadd.f32 %v138_v63, %v133_v48 }
  0xb1   :  { %v144_v8 = vadd.f32 %v139_v1, %v134_v0 }
  0xb2   :  { %v150_v10 = vadd.f32 %v145_v51, %v140_v4  ;;  %v151_v11 = vadd.f32 %v146_v57, %v141_v5  ;;  %v152_v12 = vadd.f32 %v147_v58, %v142_v6  ;;  %v153_v13 = vadd.f32 %v148_v59, %v143_v7 }
  0xb3   :  { %v154_v14 = vadd.f32 %v149_v3, %v144_v8 }
  0xb4   :  { %vm155_vm4 = vcmp.gt.f32.partialorder %v150_v10, 36.0  ;;  %vm156_vm5 = vcmp.gt.f32.partialorder %v151_v11, 36.0  ;;  %vm157_vm6 = vcmp.gt.f32.partialorder %v152_v12, 36.0  ;;  %vm158_vm7 = vcmp.gt.f32.partialorder %v153_v13, 36.0 }
  0xb5   :  { %vm159_vm9 = vcmp.gt.f32.partialorder %v154_v14, 36.0  ;;  %v160_v15 = vsel %vm155_vm4, 1e+20, %v150_v10  ;;  %v161_v16 = vsel %vm156_vm5, 1e+20, %v151_v11 }
  0xb6   :  { %v162_v17 = vsel %vm157_vm6, 1e+20, %v152_v12  ;;  %v163_v18 = vsel %vm158_vm7, 1e+20, %v153_v13  ;;  %v164_v19 = vsel %vm159_vm9, 1e+20, %v154_v14 }
  0xb7   :  { %v198_v21 = vsel %vm193_vm0, 1e+20, %v160_v15  ;;  %v199_v22 = vsel %vm194_vm1, 1e+20, %v161_v16  ;;  %v200_v23 = vsel %vm195_vm2, 1e+20, %v162_v17 }
  0xb8   :  { %v201_v24 = vsel %vm196_vm3, 1e+20, %v163_v18  ;;  %v202_v25 = vsel %vm197_vm8, 1e+20, %v164_v19  ;;  %203 = vst [vmem:[#allocation7] sm:$0xff] %v198_v21  ;;  %204 = vst [vmem:[#allocation7 + $0x8] sm:$0xff] %v199_v22 }
  0xb9   :  { %205 = vst [vmem:[#allocation7 + $0x10] sm:$0xff] %v200_v23  ;;  %206 = vst [vmem:[#allocation7 + $0x18] sm:$0xff] %v201_v24 }
  0xba   :  { %207 = vst [vmem:[#allocation7 + $0x20] sm:$0xff] %v202_v25 }
  0xbb   :  { %289 = shalt.err (!%p286_p6)
}
  0xbc   :  { %s290_s8 = scalar_lea.hbm %s377_s2, 640 }
  0xbd   :  { %p291_p7 = scmp.ne.s32.totalorder %s377_s2, %s290_s8  ;;  %p294_p8 = scmp.lt.u32.totalorder %s290_s8, %s377_s2 }
  0xbf   :  { %p296_p9 = pnand %p294_p8, %p291_p7 }
  0xc1   :  { %299 = shalt.err (!%p296_p9)
}
  0xc2   :  { %217 = dma.vmem_to_hbm [thread:$0]  %s215_s4, 640, %s377_s2, [#allocation4]  }
  0xc3   :  { %304 = dma.done.wait [#allocation4], 640  }
  0xc4   :  { %305 = vsyncadd [#allocation4], 4294966656 }
  0xc5   :  { %221 = vsyncpa [#allocation3], 1 }
  0xc6   :  { %222 = vsyncpa [#allocation6], 1 }
  0xc7   :  { %223 = vsyncpa [#allocation4], 1 }

</bundles_post_ra>
